<compile_context>
chip_gen: v6e
topology: v6e:2x2x1
jax: 0.10.0
libtpu: 0.0.40
codegen_flags: <defaults>
</compile_context>

<pallas_src>
import jax
import jax.numpy as jnp
from jax.experimental import pallas as pl
from jax.experimental.pallas import tpu as pltpu

EPS = 1e-5


def _vmem_capacity_bytes():
    try:
        return int(pltpu.get_tpu_info().vmem_capacity_bytes)
    except Exception:
        return 64 * 1024 * 1024  # conservative default: v7x per-TC VMEM


def mlp_kernel(x_ref, w1_ref, gamma_ref, beta_ref, w2_ref, b2_ref, o_ref):
    k = pl.program_id(1)  # hidden-reduction axis (innermost, "arbitrary")

    @pl.when(k == 0)
    def _():
        o_ref[...] = jnp.zeros_like(o_ref)

    # ---- Linear(dim -> hidden tile): bf16 MXU operands, f32 accumulation ----
    # Linear-1 bias intentionally omitted: it cancels under BN mean subtraction.
    h = jnp.dot(x_ref[...], w1_ref[...], preferred_element_type=jnp.float32)

    # ---- BatchNorm1d (training, biased var), one-pass stats, fused affine ----
    mean = jnp.mean(h, axis=0, keepdims=True)            # [1, TK]  (f32)
    msq = jnp.mean(h * h, axis=0, keepdims=True)         # [1, TK]  (f32)
    var = jnp.maximum(msq - mean * mean, 0.0)            # biased variance
    scale = gamma_ref[...] * jax.lax.rsqrt(var + EPS)    # EUP rsqrt (free slot)
    shift = beta_ref[...] - mean * scale
    r = jnp.maximum(h * scale + shift, 0.0)              # BN affine + ReLU

    # ---- Linear(hidden tile -> proj tile): accumulate into resident output ---
    o_ref[...] += jnp.dot(r.astype(jnp.bfloat16), w2_ref[...],
                          preferred_element_type=jnp.float32)

    @pl.when(k == pl.num_programs(1) - 1)
    def _():
        o_ref[...] += b2_ref[...]


def _pick_tiles(B, dim, hidden, proj, vmem_capacity):
    """Pick (proj tile, hidden tile) that fill the MXU and fit the VMEM budget."""
    # proj tile: keep small proj fully resident; split larger proj into 256/512
    # tiles so the leading 'parallel' grid axis can shard across v7x megacore.
    if proj <= 256:
        tn = proj
    elif proj % 512 == 0:
        tn = 512
    elif proj % 256 == 0:
        tn = 256
    else:
        tn = proj

    budget = int(0.55 * vmem_capacity)            # headroom for compiler scratch
    fixed = B * dim * 2 + B * tn * 4              # resident bf16 x + f32 out tile
    left = budget - fixed

    # Prefer 256-multiples (fills 2x256 MXU on v6e/v7x); 128-multiples otherwise
    # (native on v5e's 4x128x128 MXU).
    step = 256 if hidden % 256 == 0 else 128

    def fits(tk):
        stream = 2 * dim * tk * 2 + 2 * tk * tn * 2   # double-buffered bf16 w1/w2
        temps = 3 * B * tk * 4                        # h / BN / r f32 temporaries
        return stream + temps <= left

    cand = hidden
    while cand >= step:
        if hidden % cand == 0 and fits(cand):
            return tn, cand
        cand -= step
    return tn, (128 if hidden % 128 == 0 else hidden)  # minimal aligned fallback


def mlp_forward(x, w1, gamma, beta, w2, b2):
    """x: [B, dim]. Returns [B, projection_size] float32.

    Hot-path callers should pass x / w1 / w2 already cast to bf16 (persistently);
    the casts below are one-time fallbacks, not meant for per-step loops.
    """
    B, dim = x.shape
    hidden, proj = w2.shape
    assert w1.shape == (dim, hidden)
    # Lane/sublane-dense layout (pad in the caller for odd sizes).
    assert B % 8 == 0 and dim % 128 == 0 and hidden % 128 == 0 and proj % 128 == 0, \
        "batch must be a multiple of 8; dim/hidden/proj multiples of 128"

    x = x if x.dtype == jnp.bfloat16 else x.astype(jnp.bfloat16)
    w1 = w1 if w1.dtype == jnp.bfloat16 else w1.astype(jnp.bfloat16)
    w2 = w2 if w2.dtype == jnp.bfloat16 else w2.astype(jnp.bfloat16)
    gamma = gamma.astype(jnp.float32).reshape(1, hidden)
    beta = beta.astype(jnp.float32).reshape(1, hidden)
    b2 = b2.astype(jnp.float32).reshape(1, proj)

    vmem_capacity = _vmem_capacity_bytes()
    tn, tk = _pick_tiles(B, dim, hidden, proj, vmem_capacity)
    nj, nk = proj // tn, hidden // tk

    # matmul-1 + BN are recomputed once per proj tile (nj of them).
    flops = nj * 2 * B * dim * hidden + 2 * B * hidden * proj
    bytes_accessed = (x.size * 2 + nj * w1.size * 2 + w2.size * 2
                      + nj * (gamma.size + beta.size) * 4 + b2.size * 4
                      + B * proj * 4)
    cost = pl.CostEstimate(flops=flops, transcendentals=nj * hidden,
                           bytes_accessed=bytes_accessed)

    return pl.pallas_call(
        mlp_kernel,
        out_shape=jax.ShapeDtypeStruct((B, proj), jnp.float32),
        grid_spec=pltpu.PrefetchScalarGridSpec(
            num_scalar_prefetch=0,
            grid=(nj, nk),                                  # (proj tiles, hidden tiles)
            in_specs=[
                pl.BlockSpec((B, dim),  lambda j, k: (0, 0)),   # x: fully resident
                pl.BlockSpec((dim, tk), lambda j, k: (0, k)),   # w1: stream hidden tiles
                pl.BlockSpec((1, tk),   lambda j, k: (0, k)),   # gamma
                pl.BlockSpec((1, tk),   lambda j, k: (0, k)),   # beta
                pl.BlockSpec((tk, tn),  lambda j, k: (k, j)),   # w2: stream hidden tiles
                pl.BlockSpec((1, tn),   lambda j, k: (0, j)),   # b2: per proj tile
            ],
            out_specs=pl.BlockSpec((B, tn), lambda j, k: (0, j)),  # resident across k
        ),
        compiler_params=pltpu.CompilerParams(
            dimension_semantics=("parallel", "arbitrary"),   # proj || , hidden = reduction
            vmem_limit_bytes=min(int(0.75 * vmem_capacity), 100 * 1024 * 1024),
        ),
        cost_estimate=cost,
    )(x, w1, gamma, beta, w2, b2)


def init_params(key, dim, hidden_size, projection_size):
    """Deterministic synthetic init mimicking nn.Linear's uniform(-1/sqrt(in), 1/sqrt(in))."""
    k1, k2, k3, k4 = jax.random.split(key, 4)
    lim1 = 1.0 / jnp.sqrt(dim)
    lim2 = 1.0 / jnp.sqrt(hidden_size)
    w1 = jax.random.uniform(k1, (dim, hidden_size), jnp.float32, -lim1, lim1)
    b1 = jax.random.uniform(k2, (1, hidden_size), jnp.float32, -lim1, lim1)
    gamma = jnp.ones((1, hidden_size), jnp.float32)   # BatchNorm1d weight
    beta = jnp.zeros((1, hidden_size), jnp.float32)   # BatchNorm1d bias
    w2 = jax.random.uniform(k3, (hidden_size, projection_size), jnp.float32, -lim2, lim2)
    b2 = jax.random.uniform(k4, (1, projection_size), jnp.float32, -lim2, lim2)
    return (w1, b1, gamma, beta, w2, b2)


def mlp_reference(x, params):
    """Pure-JAX reference (keeps b1, uses the same bf16-in/f32-acc matmul precision)."""
    w1, b1, gamma, beta, w2, b2 = params
    h = jnp.dot(x.astype(jnp.bfloat16), w1.astype(jnp.bfloat16),
                preferred_element_type=jnp.float32) + b1
    mean = jnp.mean(h, axis=0, keepdims=True)
    var = jnp.mean((h - mean) ** 2, axis=0, keepdims=True)
    hn = (h - mean) * jax.lax.rsqrt(var + EPS) * gamma + beta
    r = jnp.maximum(hn, 0.0)
    return jnp.dot(r.astype(jnp.bfloat16), w2.astype(jnp.bfloat16),
                   preferred_element_type=jnp.float32) + b2


if __name__ == "__main__":
    # Small, lane/sublane-aligned shapes consistent with MLP(dim, projection_size, hidden_size)
    batch, dim, hidden_size, projection_size = 16, 256, 512, 128

    key = jax.random.PRNGKey(0)
    kx, kp = jax.random.split(key)
    x = jax.random.normal(kx, (batch, dim), jnp.float32)
    params = init_params(kp, dim, hidden_size, projection_size)
    w1, b1, gamma, beta, w2, b2 = params

    # One-time bf16 casts OUTSIDE the hot path (weights/activations would be
    # stored as bf16 persistently in a real training loop).
    x_bf = x.astype(jnp.bfloat16)
    w1_bf = w1.astype(jnp.bfloat16)
    w2_bf = w2.astype(jnp.bfloat16)

    fwd = jax.jit(mlp_forward)
    out = jax.block_until_ready(fwd(x_bf, w1_bf, gamma, beta, w2_bf, b2))
    ref = mlp_reference(x, params)

    assert out.shape == (batch, projection_size)
    assert jnp.allclose(out, ref, atol=3e-2, rtol=3e-2), \
        f"max abs err = {float(jnp.max(jnp.abs(out - ref)))}"

    print("KERNEL_OK")
</pallas_src>

<mosaic_0001>
module attributes {stable_mosaic.version = 11 : i64} {
  func.func @mlp_kernel(%arg0: i32, %arg1: i32, %arg2: memref<16x256xbf16, #tpu.memory_space<vmem>>, %arg3: memref<256x512xbf16, #tpu.memory_space<vmem>>, %arg4: memref<1x512xf32, #tpu.memory_space<vmem>>, %arg5: memref<1x512xf32, #tpu.memory_space<vmem>>, %arg6: memref<512x128xbf16, #tpu.memory_space<vmem>>, %arg7: memref<1x128xf32, #tpu.memory_space<vmem>>, %arg8: memref<16x128xf32, #tpu.memory_space<vmem>>) attributes {dimension_semantics = [#tpu.dimension_semantics<parallel>, #tpu.dimension_semantics<arbitrary>], iteration_bounds = array<i64: 1, 1>, scalar_prefetch = 0 : i64, scratch_operands = 0 : i64, tpu.core_type = #tpu.core_type<tc>, window_params = [{pipeline_mode = #tpu.pipeline_mode<synchronous>, transform_indices = @transform_0, window_bounds = array<i64: 16, 256>}, {transform_indices = @transform_1, window_bounds = array<i64: 256, 512>}, {transform_indices = @transform_2, window_bounds = array<i64: 1, 512>}, {transform_indices = @transform_3, window_bounds = array<i64: 1, 512>}, {transform_indices = @transform_4, window_bounds = array<i64: 512, 128>}, {transform_indices = @transform_5, window_bounds = array<i64: 1, 128>}, {transform_indices = @transform_6, window_bounds = array<i64: 16, 128>}]} {
    %c0_i32 = arith.constant 0 : i32
    %0 = arith.cmpi eq, %arg1, %c0_i32 : i32
    %1 = arith.extui %0 : i1 to i32
    %c0_i32_0 = arith.constant 0 : i32
    %2 = arith.cmpi ne, %1, %c0_i32_0 : i32
    scf.if %2 {
      %cst_24 = arith.constant 0.000000e+00 : f32
      %42 = vector.broadcast %cst_24 : f32 to vector<16x128xf32>
      %c0_25 = arith.constant 0 : index
      %c0_26 = arith.constant 0 : index
      %43 = vector.load %arg8[%c0_25, %c0_26] : memref<16x128xf32, #tpu.memory_space<vmem>>, vector<16x128xf32>
      tpu.vector_store %arg8[%c0_25, %c0_26], %42 {strides = array<i32>} : memref<16x128xf32, #tpu.memory_space<vmem>>, vector<16x128xf32>,
    } else {
    }
    %c0 = arith.constant 0 : index
    %c0_1 = arith.constant 0 : index
    %3 = vector.load %arg2[%c0, %c0_1] : memref<16x256xbf16, #tpu.memory_space<vmem>>, vector<16x256xbf16>
    %c0_2 = arith.constant 0 : index
    %c0_3 = arith.constant 0 : index
    %4 = vector.load %arg3[%c0_2, %c0_3] : memref<256x512xbf16, #tpu.memory_space<vmem>>, vector<256x512xbf16>
    %cst = arith.constant dense<0.000000e+00> : vector<16x512xf32>
    %5 = tpu.matmul %3, %4, %cst {dimension_numbers = #tpu.dot_dimension_numbers<[1], [0], [0], [1], [0, 0, 1, 1], [], []>} : vector<16x256xbf16>, vector<256x512xbf16>, vector<16x512xf32> -> vector<16x512xf32>
    %cst_4 = arith.constant dense<0.000000e+00> : vector<512xf32>
    %6 = vector.multi_reduction <add>, %5, %cst_4 [0] : vector<16x512xf32> to vector<512xf32>
    %7 = vector.shape_cast %6 : vector<512xf32> to vector<1x512xf32>
    %cst_5 = arith.constant 1.600000e+01 : f32
    %8 = vector.broadcast %cst_5 : f32 to vector<1x512xf32>
    %9 = arith.divf %7, %8 : vector<1x512xf32>
    %10 = arith.mulf %5, %5 : vector<16x512xf32>
    %cst_6 = arith.constant dense<0.000000e+00> : vector<512xf32>
    %11 = vector.multi_reduction <add>, %10, %cst_6 [0] : vector<16x512xf32> to vector<512xf32>
    %12 = vector.shape_cast %11 : vector<512xf32> to vector<1x512xf32>
    %cst_7 = arith.constant 1.600000e+01 : f32
    %13 = vector.broadcast %cst_7 : f32 to vector<1x512xf32>
    %14 = arith.divf %12, %13 : vector<1x512xf32>
    %15 = arith.mulf %9, %9 : vector<1x512xf32>
    %16 = arith.subf %14, %15 : vector<1x512xf32>
    %cst_8 = arith.constant 0.000000e+00 : f32
    %17 = vector.broadcast %cst_8 : f32 to vector<1x512xf32>
    %18 = arith.maximumf %16, %17 : vector<1x512xf32>
    %c0_9 = arith.constant 0 : index
    %c0_10 = arith.constant 0 : index
    %19 = vector.load %arg4[%c0_9, %c0_10] : memref<1x512xf32, #tpu.memory_space<vmem>>, vector<1x512xf32>
    %cst_11 = arith.constant 9.99999974E-6 : f32
    %20 = vector.broadcast %cst_11 : f32 to vector<1x512xf32>
    %21 = arith.addf %18, %20 : vector<1x512xf32>
    %22 = math.rsqrt %21 : vector<1x512xf32>
    %23 = arith.mulf %19, %22 : vector<1x512xf32>
    %c0_12 = arith.constant 0 : index
    %c0_13 = arith.constant 0 : index
    %24 = vector.load %arg5[%c0_12, %c0_13] : memref<1x512xf32, #tpu.memory_space<vmem>>, vector<1x512xf32>
    %25 = arith.mulf %9, %23 : vector<1x512xf32>
    %26 = arith.subf %24, %25 : vector<1x512xf32>
    %27 = vector.broadcast %23 : vector<1x512xf32> to vector<16x512xf32>
    %28 = arith.mulf %5, %27 : vector<16x512xf32>
    %29 = vector.broadcast %26 : vector<1x512xf32> to vector<16x512xf32>
    %30 = arith.addf %28, %29 : vector<16x512xf32>
    %cst_14 = arith.constant 0.000000e+00 : f32
    %31 = vector.broadcast %cst_14 : f32 to vector<16x512xf32>
    %32 = arith.maximumf %30, %31 : vector<16x512xf32>
    %c0_15 = arith.constant 0 : index
    %c0_16 = arith.constant 0 : index
    %33 = vector.load %arg8[%c0_15, %c0_16] : memref<16x128xf32, #tpu.memory_space<vmem>>, vector<16x128xf32>
    %34 = arith.truncf %32 : vector<16x512xf32> to vector<16x512xbf16>
    %c0_17 = arith.constant 0 : index
    %c0_18 = arith.constant 0 : index
    %35 = vector.load %arg6[%c0_17, %c0_18] : memref<512x128xbf16, #tpu.memory_space<vmem>>, vector<512x128xbf16>
    %cst_19 = arith.constant dense<0.000000e+00> : vector<16x128xf32>
    %36 = tpu.matmul %34, %35, %cst_19 {dimension_numbers = #tpu.dot_dimension_numbers<[1], [0], [0], [1], [0, 0, 1, 1], [], []>} : vector<16x512xbf16>, vector<512x128xbf16>, vector<16x128xf32> -> vector<16x128xf32>
    %37 = arith.addf %33, %36 : vector<16x128xf32>
    %c0_20 = arith.constant 0 : index
    %c0_21 = arith.constant 0 : index
    %38 = vector.load %arg8[%c0_20, %c0_21] : memref<16x128xf32, #tpu.memory_space<vmem>>, vector<16x128xf32>
    tpu.vector_store %arg8[%c0_20, %c0_21], %37 {strides = array<i32>} : memref<16x128xf32, #tpu.memory_space<vmem>>, vector<16x128xf32>,
    %c0_i32_22 = arith.constant 0 : i32
    %39 = arith.cmpi eq, %arg1, %c0_i32_22 : i32
    %40 = arith.extui %39 : i1 to i32
    %c0_i32_23 = arith.constant 0 : i32
    %41 = arith.cmpi ne, %40, %c0_i32_23 : i32
    scf.if %41 {
      %c0_24 = arith.constant 0 : index
      %c0_25 = arith.constant 0 : index
      %42 = vector.load %arg8[%c0_24, %c0_25] : memref<16x128xf32, #tpu.memory_space<vmem>>, vector<16x128xf32>
      %c0_26 = arith.constant 0 : index
      %c0_27 = arith.constant 0 : index
      %43 = vector.load %arg7[%c0_26, %c0_27] : memref<1x128xf32, #tpu.memory_space<vmem>>, vector<1x128xf32>
      %44 = vector.broadcast %43 : vector<1x128xf32> to vector<16x128xf32>
      %45 = arith.addf %42, %44 : vector<16x128xf32>
      %c0_28 = arith.constant 0 : index
      %c0_29 = arith.constant 0 : index
      %46 = vector.load %arg8[%c0_28, %c0_29] : memref<16x128xf32, #tpu.memory_space<vmem>>, vector<16x128xf32>
      tpu.vector_store %arg8[%c0_28, %c0_29], %45 {strides = array<i32>} : memref<16x128xf32, #tpu.memory_space<vmem>>, vector<16x128xf32>,
    } else {
    }
    return
  }
  func.func @transform_0(%arg0: i32, %arg1: i32) -> (i32, i32) {
    %c0_i32 = arith.constant 0 : i32
    %c0_i32_0 = arith.constant 0 : i32
    %c0_i32_1 = arith.constant 0 : i32
    return %c0_i32, %c0_i32_0 : i32, i32
  }
  func.func @transform_1(%arg0: i32, %arg1: i32) -> (i32, i32) {
    %c0_i32 = arith.constant 0 : i32
    %c0_i32_0 = arith.constant 0 : i32
    return %c0_i32, %arg1 : i32, i32
  }
  func.func @transform_2(%arg0: i32, %arg1: i32) -> (i32, i32) {
    %c0_i32 = arith.constant 0 : i32
    %c0_i32_0 = arith.constant 0 : i32
    return %c0_i32, %arg1 : i32, i32
  }
  func.func @transform_3(%arg0: i32, %arg1: i32) -> (i32, i32) {
    %c0_i32 = arith.constant 0 : i32
    %c0_i32_0 = arith.constant 0 : i32
    return %c0_i32, %arg1 : i32, i32
  }
  func.func @transform_4(%arg0: i32, %arg1: i32) -> (i32, i32) {
    %c0_i32 = arith.constant 0 : i32
    return %arg1, %arg0 : i32, i32
  }
  func.func @transform_5(%arg0: i32, %arg1: i32) -> (i32, i32) {
    %c0_i32 = arith.constant 0 : i32
    %c0_i32_0 = arith.constant 0 : i32
    return %c0_i32, %arg0 : i32, i32
  }
  func.func @transform_6(%arg0: i32, %arg1: i32) -> (i32, i32) {
    %c0_i32 = arith.constant 0 : i32
    %c0_i32_0 = arith.constant 0 : i32
    return %c0_i32, %arg0 : i32, i32
  }
}

</mosaic_0001>

<bundles_post_ra>
// kernel: mlp_forward.1
= control target key start
LH: loop header
LB: loop body
LE: loop exit
PB: predicated region body
PF: predicated region fallthrough
CT: control target
= control target key end

     0   :  { %11 = vsyncpa [#allocation3], 0  ;;  %s1699_s0 = inlined_call_operand.hbm [shape: bf16[16,256], index: 0, kind: input, shape index: {}]   ;;  %s1700_s1 = inlined_call_operand.hbm [shape: bf16[256,512], index: 1, kind: input, shape index: {}]   ;;  %s1701_s2 = inlined_call_operand.hbm [shape: f32[1,512], index: 2, kind: input, shape index: {}]   ;;  %s1702_s3 = inlined_call_operand.vmem [shape: f32[1,512], index: 3, kind: input, shape index: {}]   ;;  %s1703_s4 = inlined_call_operand.hbm [shape: bf16[512,128], index: 4, kind: input, shape index: {}]   ;;  %s1704_s5 = inlined_call_operand.vmem [shape: f32[1,128], index: 5, kind: input, shape index: {}]   ;;  %s1705_s6 = inlined_call_operand.hbm [shape: f32[16,128], index: 6, kind: output, shape index: {}]  }
   0x1   :  { %12 = vsyncpa [#allocation6], 0 }
   0x2   :  { %13 = vsyncpa [#allocation9], 0 }
   0x3   :  { %14 = vsyncpa [#allocation4], 0  ;;  %s1577_s21 = smov [#allocation5]  }
   0x4   :  { %s32_s22 = sshll.u32 %s1577_s21, 4  ;;  %s33_s22 = int_to_ptr.vmem [resolvable:$true] %s32_s22 }
   0x5   :  { %s1477_s23 = scalar_lea.vmem %s33_s22, 8192  ;;  %p1482_p1 = scmp.lt.s32.totalorder %s33_s22, %s33_s22 }
   0x6   :  { %p1478_p0 = scmp.ne.s32.totalorder %s33_s22, %s1477_s23  ;;  %p1483_p2 = scmp.lt.s32.totalorder %s1477_s23, %s1477_s23 }
   0x8   :  { %p1484_p3 = por %p1483_p2, %p1482_p1 }
   0xa   :  { %p1485_p4 = pnand %p1484_p3, %p1478_p0 }
   0xc   :  { %1488 = shalt.err (!%p1485_p4)
}
   0xd   :  { %s1578_s24 = smov 256   ;;  %s1579_s25 = smov 16  }
   0xe   :  { %38 = dma.hbm_to_vmem [thread:$0]  %s1700_s1, 8192, %s33_s22, [#allocation6], %s1578_s24, %s1578_s24, %s1579_s25  }
   0xf   :  { %s1580_s28 = smov [#allocation2]  }
  0x10   :  { %s20_s29 = sshll.u32 %s1580_s28, 4  ;;  %s21_s29 = int_to_ptr.vmem [resolvable:$true] %s20_s29 }
  0x11   :  { %s1497_s30 = scalar_lea.vmem %s21_s29, 256  ;;  %p1502_p6 = scmp.lt.s32.totalorder %s21_s29, %s21_s29 }
  0x12   :  { %p1498_p5 = scmp.ne.s32.totalorder %s21_s29, %s1497_s30  ;;  %p1503_p7 = scmp.lt.s32.totalorder %s1497_s30, %s1497_s30 }
  0x14   :  { %p1504_p8 = por %p1503_p7, %p1502_p6 }
  0x16   :  { %p1505_p9 = pnand %p1504_p8, %p1498_p5 }
  0x18   :  { %1508 = shalt.err (!%p1505_p9)
}
  0x19   :  { %s1581_s7 = smov 128   ;;  %s1582_s8 = smov 8  }
  0x1a   :  { %26 = dma.hbm_to_vmem [thread:$0]  %s1699_s0, 256, %s21_s29, [#allocation3], %s1581_s7, %s1581_s7, %s1582_s8  }
  0x1b   :  { %s1583_s1 = smov [#allocation7]   ;;  %s1584_s12 = smov [#allocation8]  }
  0x1c   :  { %s45_s11 = sshll.u32 %s1583_s1, 4  ;;  %s56_s13 = sshll.u32 %s1584_s12, 4  ;;  %s46_s11 = int_to_ptr.vmem [resolvable:$true] %s45_s11  ;;  %s57_s13 = int_to_ptr.vmem [resolvable:$true] %s56_s13 }
  0x1d   :  { %s1517_s14 = scalar_lea.vmem %s46_s11, 64  ;;  %p1522_p11 = scmp.lt.s32.totalorder %s46_s11, %s46_s11 }
  0x1e   :  { %p1518_p10 = scmp.ne.s32.totalorder %s46_s11, %s1517_s14  ;;  %p1523_p12 = scmp.lt.s32.totalorder %s1517_s14, %s1517_s14 }
  0x20   :  { %p1524_p13 = por %p1523_p12, %p1522_p11 }
  0x22   :  { %p1525_p0 = pnand %p1524_p13, %p1518_p10 }
  0x24   :  { %1528 = shalt.err (!%p1525_p0)
}
  0x25   :  { %48 = dma.hbm_to_vmem [thread:$0]  %s1701_s2, 64, %s46_s11, [#allocation6]  }
  0x26   :  { %s1537_s17 = scalar_lea.vmem %s57_s13, 4096  ;;  %p1542_p2 = scmp.lt.s32.totalorder %s57_s13, %s57_s13 }
  0x27   :  { %p1538_p1 = scmp.ne.s32.totalorder %s57_s13, %s1537_s17  ;;  %p1543_p3 = scmp.lt.s32.totalorder %s1537_s17, %s1537_s17 }
  0x29   :  { %p1544_p4 = por %p1543_p3, %p1542_p2 }
  0x2b   :  { %p1545_p5 = pnand %p1544_p4, %p1538_p1 }
  0x2d   :  { %1548 = shalt.err (!%p1545_p5)
}
  0x2e   :  { %s1585_s0 = smov 64   ;;  %s1586_s18 = smov 4  }
  0x2f   :  { %62 = dma.hbm_to_vmem [thread:$0]  %s1703_s4, 4096, %s57_s13, [#allocation9], %s1585_s0, %s1585_s0, %s1586_s18  }
  0x30   :  { %1569 = dma.done.wait [#allocation3], 256  }
  0x31   :  { %1570 = vsyncadd [#allocation3], 4294967040 }
  0x32   :  { %1571 = dma.done.wait [#allocation6], 8256  }
  0x33   :  { %1572 = vsyncadd [#allocation6], 4294959040 }
  0x34   :  { %1573 = dma.done.wait [#allocation9], 4096  }
  0x35   :  { %1574 = vsyncadd [#allocation9], 4294963200  ;;  %v1330_v0 = vld [vmem:[#allocation5 + $0xe4] ss:$16 sps:$4 sm:$0xff]   ;;  %v1332_v1 = vld [vmem:[#allocation5 + $0xec] ss:$16 sps:$4 sm:$0xff]  }
  0x36   :  { %480 = vmatprep.subr.bf16.mxu0 %v1330_v0  ;;  %v1334_v2 = vld [vmem:[#allocation5 + $0xe0] ss:$16 sps:$4 sm:$0xff]   ;;  %v1335_v3 = vld [vmem:[#allocation5 + $0xe8] ss:$16 sps:$4 sm:$0xff]   ;;  %523 = vmatprep.subr.bf16.mxu1 %v1332_v1  ;;  %v1336_v4 = vld [vmem:[#allocation5 + $0xc4] ss:$16 sps:$4 sm:$0xff]  }
  0x37   :  { %481 = vmatpush1.bf16.msra.mxu0 %v1334_v2  ;;  %524 = vmatpush1.bf16.msra.mxu1 %v1335_v3  ;;  %v1338_v5 = vld [vmem:[#allocation5 + $0xcc] ss:$16 sps:$4 sm:$0xff]   ;;  %v1340_v6 = vld [vmem:[#allocation5 + $0xc0] ss:$16 sps:$4 sm:$0xff]   ;;  %v1341_v7 = vld [vmem:[#allocation5 + $0xc8] ss:$16 sps:$4 sm:$0xff]  }
  0x38   :  { %482 = vmatprep.subr.bf16.mxu0 %v1336_v4  ;;  %525 = vmatprep.subr.bf16.mxu1 %v1338_v5  ;;  %v1342_v8 = vld [vmem:[#allocation5 + $0xa4] ss:$16 sps:$4 sm:$0xff]   ;;  %v1344_v9 = vld [vmem:[#allocation5 + $0xac] ss:$16 sps:$4 sm:$0xff]   ;;  %v1346_v10 = vld [vmem:[#allocation5 + $0xa0] ss:$16 sps:$4 sm:$0xff]  }
  0x39   :  { %v1347_v11 = vld [vmem:[#allocation5 + $0xa8] ss:$16 sps:$4 sm:$0xff]   ;;  %v1348_v12 = vld [vmem:[#allocation5 + $0x84] ss:$16 sps:$4 sm:$0xff]   ;;  %v1350_v13 = vld [vmem:[#allocation5 + $0x8c] ss:$16 sps:$4 sm:$0xff]  }
  0x3a   :  { %v1352_v14 = vld [vmem:[#allocation5 + $0x80] ss:$16 sps:$4 sm:$0xff]   ;;  %v1353_v15 = vld [vmem:[#allocation5 + $0x88] ss:$16 sps:$4 sm:$0xff]   ;;  %v1354_v16 = vld [vmem:[#allocation5 + $0x64] ss:$16 sps:$4 sm:$0xff]  }
  0x3b   :  { %483 = vmatpush1.bf16.msra.mxu0 %v1340_v6  ;;  %526 = vmatpush1.bf16.msra.mxu1 %v1341_v7  ;;  %v1356_v17 = vld [vmem:[#allocation5 + $0x6c] ss:$16 sps:$4 sm:$0xff]   ;;  %v1358_v18 = vld [vmem:[#allocation5 + $0x60] ss:$16 sps:$4 sm:$0xff]   ;;  %v1359_v19 = vld [vmem:[#allocation5 + $0x68] ss:$16 sps:$4 sm:$0xff]  }
  0x3c   :  { %484 = vmatprep.subr.bf16.mxu0 %v1342_v8  ;;  %527 = vmatprep.subr.bf16.mxu1 %v1344_v9  ;;  %v1360_v20 = vld [vmem:[#allocation5 + $0x44] ss:$16 sps:$4 sm:$0xff]   ;;  %v1362_v21 = vld [vmem:[#allocation5 + $0x4c] ss:$16 sps:$4 sm:$0xff]   ;;  %v1364_v22 = vld [vmem:[#allocation5 + $0x40] ss:$16 sps:$4 sm:$0xff]  }
  0x3d   :  { %v1365_v23 = vld [vmem:[#allocation5 + $0x48] ss:$16 sps:$4 sm:$0xff]   ;;  %v1366_v24 = vld [vmem:[#allocation5 + $0x24] ss:$16 sps:$4 sm:$0xff]   ;;  %v1368_v25 = vld [vmem:[#allocation5 + $0x2c] ss:$16 sps:$4 sm:$0xff]  }
  0x3e   :  { %v1370_v26 = vld [vmem:[#allocation5 + $0x20] ss:$16 sps:$4 sm:$0xff]   ;;  %v1371_v27 = vld [vmem:[#allocation5 + $0x28] ss:$16 sps:$4 sm:$0xff]   ;;  %v1372_v28 = vld [vmem:[#allocation5 + $0x4] ss:$16 sps:$4 sm:$0xff]  }
  0x3f   :  { %485 = vmatpush1.bf16.msra.mxu0 %v1346_v10  ;;  %528 = vmatpush1.bf16.msra.mxu1 %v1347_v11  ;;  %v1374_v29 = vld [vmem:[#allocation5 + $0xc] ss:$16 sps:$4 sm:$0xff]   ;;  %v1376_v30 = vld [vmem:[#allocation5] ss:$16 sps:$4 sm:$0xff]   ;;  %v1377_v31 = vld [vmem:[#allocation5 + $0x8] ss:$16 sps:$4 sm:$0xff]  }
  0x40   :  { %486 = vmatprep.subr.bf16.mxu0 %v1348_v12  ;;  %529 = vmatprep.subr.bf16.mxu1 %v1350_v13  ;;  %v1378_v32 = vld [vmem:[#allocation5 + $0x1e4] ss:$16 sps:$4 sm:$0xff]   ;;  %v1380_v33 = vld [vmem:[#allocation5 + $0x1ec] ss:$16 sps:$4 sm:$0xff]   ;;  %v1382_v34 = vld [vmem:[#allocation5 + $0x1e0] ss:$16 sps:$4 sm:$0xff]  }
  0x41   :  { %v1383_v35 = vld [vmem:[#allocation5 + $0x1e8] ss:$16 sps:$4 sm:$0xff]   ;;  %v1384_v36 = vld [vmem:[#allocation5 + $0x1c4] ss:$16 sps:$4 sm:$0xff]   ;;  %v1386_v37 = vld [vmem:[#allocation5 + $0x1cc] ss:$16 sps:$4 sm:$0xff]  }
  0x42   :  { %v1388_v38 = vld [vmem:[#allocation5 + $0x1c0] ss:$16 sps:$4 sm:$0xff]   ;;  %v1389_v39 = vld [vmem:[#allocation5 + $0x1c8] ss:$16 sps:$4 sm:$0xff]   ;;  %v1390_v40 = vld [vmem:[#allocation5 + $0x1a4] ss:$16 sps:$4 sm:$0xff]  }
  0x43   :  { %487 = vmatpush1.bf16.msra.mxu0 %v1352_v14  ;;  %530 = vmatpush1.bf16.msra.mxu1 %v1353_v15  ;;  %v1392_v41 = vld [vmem:[#allocation5 + $0x1ac] ss:$16 sps:$4 sm:$0xff]   ;;  %v1394_v42 = vld [vmem:[#allocation5 + $0x1a0] ss:$16 sps:$4 sm:$0xff]   ;;  %v1395_v43 = vld [vmem:[#allocation5 + $0x1a8] ss:$16 sps:$4 sm:$0xff]  }
  0x44   :  { %488 = vmatprep.subr.bf16.mxu0 %v1354_v16  ;;  %531 = vmatprep.subr.bf16.mxu1 %v1356_v17  ;;  %v1396_v44 = vld [vmem:[#allocation5 + $0x184] ss:$16 sps:$4 sm:$0xff]   ;;  %v1398_v45 = vld [vmem:[#allocation5 + $0x18c] ss:$16 sps:$4 sm:$0xff]   ;;  %v1400_v46 = vld [vmem:[#allocation5 + $0x180] ss:$16 sps:$4 sm:$0xff]  }
  0x45   :  { %v1401_v47 = vld [vmem:[#allocation5 + $0x188] ss:$16 sps:$4 sm:$0xff]   ;;  %v1402_v48 = vld [vmem:[#allocation5 + $0x164] ss:$16 sps:$4 sm:$0xff]   ;;  %v1404_v49 = vld [vmem:[#allocation5 + $0x16c] ss:$16 sps:$4 sm:$0xff]  }
  0x46   :  { %v1428_v50 = vld [vmem:[#allocation2 + $0x4] ss:$8 sps:$4 sm:$0xff]   ;;  %v1406_v51 = vld [vmem:[#allocation5 + $0x160] ss:$16 sps:$4 sm:$0xff]   ;;  %v1407_v52 = vld [vmem:[#allocation5 + $0x168] ss:$16 sps:$4 sm:$0xff]  }
  0x47   :  { %489 = vmatpush1.bf16.msra.mxu0 %v1358_v18  ;;  %532 = vmatpush1.bf16.msra.mxu1 %v1359_v19  ;;  %v1408_v53 = vld [vmem:[#allocation5 + $0x144] ss:$16 sps:$4 sm:$0xff]   ;;  %v1410_v54 = vld [vmem:[#allocation5 + $0x14c] ss:$16 sps:$4 sm:$0xff]   ;;  %v1412_v55 = vld [vmem:[#allocation5 + $0x140] ss:$16 sps:$4 sm:$0xff]  }
  0x48   :  { %490 = vmatprep.subr.bf16.mxu0 %v1360_v20  ;;  %533 = vmatprep.subr.bf16.mxu1 %v1362_v21  ;;  %v1413_v56 = vld [vmem:[#allocation5 + $0x148] ss:$16 sps:$4 sm:$0xff]   ;;  %v1414_v57 = vld [vmem:[#allocation5 + $0x124] ss:$16 sps:$4 sm:$0xff]   ;;  %v1416_v58 = vld [vmem:[#allocation5 + $0x12c] ss:$16 sps:$4 sm:$0xff]  }
  0x49   :  { %512 = vmatprep.mubr.bf16.mxu0 %v1428_v50  ;;  %555 = vmatprep.mubr.bf16.mxu1 %v1428_v50  ;;  %v1418_v59 = vld [vmem:[#allocation5 + $0x120] ss:$16 sps:$4 sm:$0xff]   ;;  %v1419_v60 = vld [vmem:[#allocation5 + $0x128] ss:$16 sps:$4 sm:$0xff]   ;;  %v1420_v61 = vld [vmem:[#allocation5 + $0x104] ss:$16 sps:$4 sm:$0xff]  }
  0x4a   :  { %v1422_v62 = vld [vmem:[#allocation5 + $0x10c] ss:$16 sps:$4 sm:$0xff]   ;;  %v1424_v63 = vld [vmem:[#allocation5 + $0x100] ss:$16 sps:$4 sm:$0xff]   ;;  %v1425_v0 = vld [vmem:[#allocation5 + $0x108] ss:$16 sps:$4 sm:$0xff]  }
  0x4b   :  { %491 = vmatpush1.bf16.msra.mxu0 %v1364_v22  ;;  %534 = vmatpush1.bf16.msra.mxu1 %v1365_v23  ;;  %v1426_v1 = vld [vmem:[#allocation2] ss:$8 sps:$4 sm:$0xff]   ;;  %v1429_v2 = vld [vmem:[#allocation8 + $0x78] sm:$0xff]   ;;  %v1441_v14 = vld [vmem:[#allocation8 + $0x60] sm:$0xff]   ;;  %s1588_s22 = smov [#allocation10]  }
  0x4c   :  { %492 = vmatprep.subr.bf16.mxu0 %v1366_v24  ;;  %535 = vmatprep.subr.bf16.mxu1 %v1368_v25  ;;  %v1430_v3 = vld [vmem:[#allocation8 + $0xf8] sm:$0xff]   ;;  %v1433_v6 = vld [vmem:[#allocation8 + $0x70] sm:$0xff]   ;;  %v1437_v10 = vld [vmem:[#allocation8 + $0x68] sm:$0xff]   ;;  %s1160_s23 = sshll.u32 %s1588_s22, 4  ;;  %s1161_s23 = int_to_ptr.vmem [resolvable:$true] %s1160_s23 }
  0x4d   :  { %v1431_v4 = vld [vmem:[#allocation8 + $0x38] sm:$0xff]   ;;  %v1434_v7 = vld [vmem:[#allocation8 + $0xf0] sm:$0xff]   ;;  %v1438_v11 = vld [vmem:[#allocation8 + $0xe8] sm:$0xff]   ;;  %s1549_s24 = scalar_lea.vmem %s1161_s23, 256  ;;  %p1554_p7 = scmp.lt.s32.totalorder %s1161_s23, %s1161_s23 }
  0x4e   :  { %v1432_v5 = vld [vmem:[#allocation8 + $0xb8] sm:$0xff]   ;;  %v1435_v8 = vld [vmem:[#allocation8 + $0x30] sm:$0xff]   ;;  %v1439_v12 = vld [vmem:[#allocation8 + $0x28] sm:$0xff]   ;;  %p1550_p6 = scmp.ne.s32.totalorder %s1161_s23, %s1549_s24  ;;  %p1555_p8 = scmp.lt.s32.totalorder %s1549_s24, %s1549_s24 }
  0x4f   :  { %493 = vmatpush1.bf16.msra.mxu0 %v1370_v26  ;;  %536 = vmatpush1.bf16.msra.mxu1 %v1371_v27  ;;  %v1436_v9 = vld [vmem:[#allocation8 + $0xb0] sm:$0xff]   ;;  %v1440_v13 = vld [vmem:[#allocation8 + $0xa8] sm:$0xff]   ;;  %v1442_v15 = vld [vmem:[#allocation8 + $0xe0] sm:$0xff]  }
  0x50   :  { %494 = vmatprep.subr.bf16.mxu0 %v1372_v28  ;;  %537 = vmatprep.subr.bf16.mxu1 %v1374_v29  ;;  %v1443_v16 = vld [vmem:[#allocation8 + $0x20] sm:$0xff]   ;;  %v1445_v18 = vld [vmem:[#allocation8 + $0x58] sm:$0xff]   ;;  %v1449_v22 = vld [vmem:[#allocation8 + $0x50] sm:$0xff]   ;;  %p1556_p9 = por %p1555_p8, %p1554_p7 }
  0x51   :  { %v1444_v17 = vld [vmem:[#allocation8 + $0xa0] sm:$0xff]   ;;  %v1446_v19 = vld [vmem:[#allocation8 + $0xd8] sm:$0xff]   ;;  %v1450_v23 = vld [vmem:[#allocation8 + $0xd0] sm:$0xff]  }
  0x52   :  { %v1447_v20 = vld [vmem:[#allocation8 + $0x18] sm:$0xff]   ;;  %v1451_v24 = vld [vmem:[#allocation8 + $0x10] sm:$0xff]   ;;  %v1453_v26 = vld [vmem:[#allocation8 + $0x48] sm:$0xff]   ;;  %p1557_p10 = pnand %p1556_p9, %p1550_p6 }
  0x53   :  { %495 = vmatpush1.bf16.msra.mxu0 %v1376_v30  ;;  %538 = vmatpush1.bf16.msra.mxu1 %v1377_v31  ;;  %v1448_v21 = vld [vmem:[#allocation8 + $0x98] sm:$0xff]   ;;  %v1452_v25 = vld [vmem:[#allocation8 + $0x90] sm:$0xff]   ;;  %v1454_v27 = vld [vmem:[#allocation8 + $0xc8] sm:$0xff]  }
  0x54   :  { %496 = vmatprep.subr.bf16.mxu0 %v1378_v32  ;;  %539 = vmatprep.subr.bf16.mxu1 %v1380_v33  ;;  %v1455_v28 = vld [vmem:[#allocation8 + $0x8] sm:$0xff]   ;;  %v1457_v30 = vld [vmem:[#allocation8 + $0x40] sm:$0xff]  }
  0x55   :  { %v1456_v29 = vld [vmem:[#allocation8 + $0x88] sm:$0xff]   ;;  %v1458_v31 = vld [vmem:[#allocation8 + $0xc0] sm:$0xff]  }
  0x56   :  { %v1459_v32 = vld [vmem:[#allocation8] sm:$0xff]  }
  0x57   :  { %497 = vmatpush2.bf16.msra.mxu0 %v1382_v34  ;;  %540 = vmatpush2.bf16.msra.mxu1 %v1383_v35  ;;  %v1460_v33 = vld [vmem:[#allocation8 + $0x80] sm:$0xff]  }
  0x58   :  { %498 = vmatprep.subr.bf16.mxu0 %v1384_v36  ;;  %541 = vmatprep.subr.bf16.mxu1 %v1386_v37 }
  0x5b   :  { %499 = vmatpush2.bf16.msra.mxu0 %v1388_v38  ;;  %542 = vmatpush2.bf16.msra.mxu1 %v1389_v39 }
  0x5c   :  { %500 = vmatprep.subr.bf16.mxu0 %v1390_v40  ;;  %543 = vmatprep.subr.bf16.mxu1 %v1392_v41 }
  0x5f   :  { %501 = vmatpush2.bf16.msra.mxu0 %v1394_v42  ;;  %544 = vmatpush2.bf16.msra.mxu1 %v1395_v43 }
  0x60   :  { %502 = vmatprep.subr.bf16.mxu0 %v1396_v44  ;;  %545 = vmatprep.subr.bf16.mxu1 %v1398_v45 }
  0x63   :  { %503 = vmatpush2.bf16.msra.mxu0 %v1400_v46  ;;  %546 = vmatpush2.bf16.msra.mxu1 %v1401_v47 }
  0x64   :  { %504 = vmatprep.subr.bf16.mxu0 %v1402_v48  ;;  %547 = vmatprep.subr.bf16.mxu1 %v1404_v49 }
  0x67   :  { %505 = vmatpush2.bf16.msra.mxu0 %v1406_v51  ;;  %548 = vmatpush2.bf16.msra.mxu1 %v1407_v52 }
  0x68   :  { %506 = vmatprep.subr.bf16.mxu0 %v1408_v53  ;;  %549 = vmatprep.subr.bf16.mxu1 %v1410_v54 }
  0x6b   :  { %507 = vmatpush2.bf16.msra.mxu0 %v1412_v55  ;;  %550 = vmatpush2.bf16.msra.mxu1 %v1413_v56 }
  0x6c   :  { %508 = vmatprep.subr.bf16.mxu0 %v1414_v57  ;;  %551 = vmatprep.subr.bf16.mxu1 %v1416_v58 }
  0x6f   :  { %509 = vmatpush2.bf16.msra.mxu0 %v1418_v59  ;;  %552 = vmatpush2.bf16.msra.mxu1 %v1419_v60 }
  0x70   :  { %510 = vmatprep.subr.bf16.mxu0 %v1420_v61  ;;  %553 = vmatprep.subr.bf16.mxu1 %v1422_v62 }
  0x73   :  { %511 = vmatpush2.bf16.msra.mxu0 %v1424_v63  ;;  %554 = vmatpush2.bf16.msra.mxu1 %v1425_v0 }
  0x74   :  { %1273 = vmatprep.subr.bf16.mxu0 %v1429_v2  ;;  %1295 = vmatprep.subr.bf16.mxu1 %v1430_v3 }
  0x76   :  { %513 = vmatmul.mubr.bf16.vlgmr.msra.gmra.mxu0 %v1426_v1  ;;  %556 = vmatmul.mubr.bf16.vlgmr.msra.gmra.mxu1 %v1426_v1 }
  0x77   :  { %1274 = vmatpush3.bf16.msra.mxu0 %v1431_v4  ;;  %1296 = vmatpush3.bf16.msra.mxu1 %v1432_v5 }
  0x78   :  { %1275 = vmatprep.subr.bf16.mxu0 %v1433_v6  ;;  %1297 = vmatprep.subr.bf16.mxu1 %v1434_v7 }
  0x7b   :  { %1276 = vmatpush3.bf16.msra.mxu0 %v1435_v8  ;;  %1298 = vmatpush3.bf16.msra.mxu1 %v1436_v9 }
  0x7c   :  { %1277 = vmatprep.subr.bf16.mxu0 %v1437_v10  ;;  %1299 = vmatprep.subr.bf16.mxu1 %v1438_v11 }
  0x7f   :  { %1278 = vmatpush3.bf16.msra.mxu0 %v1439_v12  ;;  %1300 = vmatpush3.bf16.msra.mxu1 %v1440_v13 }
  0x80   :  { %1279 = vmatprep.subr.bf16.mxu0 %v1441_v14  ;;  %1301 = vmatprep.subr.bf16.mxu1 %v1442_v15 }
  0x83   :  { %1280 = vmatpush3.bf16.msra.mxu0 %v1443_v16  ;;  %1302 = vmatpush3.bf16.msra.mxu1 %v1444_v17 }
  0x84   :  { %1281 = vmatprep.subr.bf16.mxu0 %v1445_v18  ;;  %1303 = vmatprep.subr.bf16.mxu1 %v1446_v19 }
  0x87   :  { %1282 = vmatpush3.bf16.msra.mxu0 %v1447_v20  ;;  %1304 = vmatpush3.bf16.msra.mxu1 %v1448_v21 }
  0x88   :  { %1283 = vmatprep.subr.bf16.mxu0 %v1449_v22  ;;  %1305 = vmatprep.subr.bf16.mxu1 %v1450_v23 }
  0x8b   :  { %1284 = vmatpush3.bf16.msra.mxu0 %v1451_v24  ;;  %1306 = vmatpush3.bf16.msra.mxu1 %v1452_v25 }
  0x8c   :  { %1285 = vmatprep.subr.bf16.mxu0 %v1453_v26  ;;  %1307 = vmatprep.subr.bf16.mxu1 %v1454_v27 }
  0x8f   :  { %1286 = vmatpush3.bf16.msra.mxu0 %v1455_v28  ;;  %1308 = vmatpush3.bf16.msra.mxu1 %v1456_v29 }
  0x90   :  { %1287 = vmatprep.subr.bf16.mxu0 %v1457_v30  ;;  %1309 = vmatprep.subr.bf16.mxu1 %v1458_v31 }
  0x93   :  { %1288 = vmatpush3.bf16.msra.mxu0 %v1459_v32  ;;  %1310 = vmatpush3.bf16.msra.mxu1 %v1460_v33 }
 0x136   :  { %v1639_v34 = vpop.f32.mrf.mxu0  ;;  %v1641_v35 = vpop.f32.mrf.mxu1 }
 0x137   :  { %v599_v38 = vmul.f32 %v1639_v34, %v1639_v34  ;;  %v601_v39 = vmul.f32 %v1641_v35, %v1641_v35 }
 0x138   :  { %v1643_v36 = vpop.f32.mrf.mxu0  ;;  %v1645_v37 = vpop.f32.mrf.mxu1 }
 0x139   :  { %v600_v46 = vmul.f32 %v1643_v36, %v1643_v36  ;;  %v602_v47 = vmul.f32 %v1645_v37, %v1645_v37 }
 0x13a   :  { %v1651_v40 = vpop.f32.mrf.mxu0  ;;  %v1653_v41 = vpop.f32.mrf.mxu1 }
 0x13b   :  { %v566_v42 = vadd.f32 %v1651_v40, %v1639_v34  ;;  %v603_v43 = vmul.f32 %v1651_v40, %v1651_v40  ;;  %v580_v44 = vadd.f32 %v1653_v41, %v1641_v35  ;;  %v605_v45 = vmul.f32 %v1653_v41, %v1653_v41 }
 0x13c   :  { %v1667_v48 = vpop.f32.mrf.mxu0  ;;  %v1669_v49 = vpop.f32.mrf.mxu1 }
 0x13d   :  { %v567_v50 = vrot.slane %v566_v42, 4  ;;  %v607_v51 = vadd.f32 %v603_v43, %v599_v38  ;;  %v581_v52 = vrot.slane %v580_v44, 4  ;;  %v621_v53 = vadd.f32 %v605_v45, %v601_v39 }
 0x13e   :  { %v573_v54 = vadd.f32 %v1667_v48, %v1643_v36  ;;  %v604_v55 = vmul.f32 %v1667_v48, %v1667_v48  ;;  %v587_v56 = vadd.f32 %v1669_v49, %v1645_v37  ;;  %v606_v57 = vmul.f32 %v1669_v49, %v1669_v49 }
 0x13f   :  { %v568_v58 = vadd.f32 %v567_v50, %v566_v42  ;;  %v608_v59 = vrot.slane %v607_v51, 4  ;;  %v582_v60 = vadd.f32 %v581_v52, %v580_v44  ;;  %v622_v61 = vrot.slane %v621_v53, 4 }
 0x140   :  { %v574_v62 = vrot.slane %v573_v54, 4  ;;  %v614_v63 = vadd.f32 %v604_v55, %v600_v46  ;;  %v588_v0 = vrot.slane %v587_v56, 4  ;;  %v628_v1 = vadd.f32 %v606_v57, %v602_v47 }
 0x141   :  { %v569_v2 = vrot.slane %v568_v58, 2  ;;  %v609_v3 = vadd.f32 %v608_v59, %v607_v51  ;;  %v583_v4 = vrot.slane %v582_v60, 2  ;;  %v623_v5 = vadd.f32 %v622_v61, %v621_v53 }
 0x142   :  { %v575_v6 = vadd.f32 %v574_v62, %v573_v54  ;;  %v615_v7 = vrot.slane %v614_v63, 4  ;;  %v589_v8 = vadd.f32 %v588_v0, %v587_v56  ;;  %v629_v9 = vrot.slane %v628_v1, 4 }
 0x143   :  { %v570_v10 = vadd.f32 %v569_v2, %v568_v58  ;;  %v610_v11 = vrot.slane %v609_v3, 2  ;;  %v584_v12 = vadd.f32 %v583_v4, %v582_v60  ;;  %v624_v13 = vrot.slane %v623_v5, 2 }
 0x144   :  { %v576_v14 = vrot.slane %v575_v6, 2  ;;  %v616_v15 = vadd.f32 %v615_v7, %v614_v63  ;;  %v590_v16 = vrot.slane %v589_v8, 2  ;;  %v630_v17 = vadd.f32 %v629_v9, %v628_v1 }
 0x145   :  { %v571_v18 = vrot.slane %v570_v10, 1  ;;  %v611_v19 = vadd.f32 %v610_v11, %v609_v3  ;;  %v585_v20 = vrot.slane %v584_v12, 1  ;;  %v625_v21 = vadd.f32 %v624_v13, %v623_v5 }
 0x146   :  { %v577_v22 = vadd.f32 %v576_v14, %v575_v6  ;;  %v617_v23 = vrot.slane %v616_v15, 2  ;;  %v591_v24 = vadd.f32 %v590_v16, %v589_v8  ;;  %v631_v25 = vrot.slane %v630_v17, 2 }
 0x147   :  { %v572_v26 = vadd.f32 %v571_v18, %v570_v10  ;;  %v612_v27 = vrot.slane %v611_v19, 1  ;;  %v586_v28 = vadd.f32 %v585_v20, %v584_v12  ;;  %v626_v29 = vrot.slane %v625_v21, 1 }
 0x148   :  { %v578_v30 = vrot.slane %v577_v22, 1  ;;  %v618_v31 = vadd.f32 %v617_v23, %v616_v15  ;;  %v592_v32 = vrot.slane %v591_v24, 1  ;;  %v632_v33 = vadd.f32 %v631_v25, %v630_v17  ;;  %v651_v25 = vld [vmem:[#allocation7] sm:$0xf] }
 0x149   :  { %v595_v38 = vmul.f32 0.0625, %v572_v26  ;;  %v613_v39 = vadd.f32 %v612_v27, %v611_v19  ;;  %v597_v42 = vmul.f32 0.0625, %v586_v28  ;;  %v627_v43 = vadd.f32 %v626_v29, %v625_v21 }
 0x14a   :  { %v579_v44 = vadd.f32 %v578_v30, %v577_v22  ;;  %v619_v45 = vrot.slane %v618_v31, 1  ;;  %v593_v46 = vadd.f32 %v592_v32, %v591_v24  ;;  %v633_v47 = vrot.slane %v632_v33, 1 }
 0x14b   :  { %v635_v50 = vmul.f32 0.0625, %v613_v39  ;;  %v639_v51 = vmul.f32 %v595_v38, %v595_v38  ;;  %v637_v52 = vmul.f32 0.0625, %v627_v43  ;;  %v641_v53 = vmul.f32 %v597_v42, %v597_v42 }
 0x14c   :  { %v596_v54 = vmul.f32 0.0625, %v579_v44  ;;  %v620_v55 = vadd.f32 %v619_v45, %v618_v31  ;;  %v598_v56 = vmul.f32 0.0625, %v593_v46  ;;  %v634_v57 = vadd.f32 %v633_v47, %v632_v33 }
 0x14d   :  { %v643_v58 = vsub.f32 %v635_v50, %v639_v51  ;;  %v645_v59 = vsub.f32 %v637_v52, %v641_v53  ;;  %v1587_v10 = vmov 1966171168   ;;  %v669_v12 = vlaneseq }
 0x14e   :  { %v636_v60 = vmul.f32 0.0625, %v620_v55  ;;  %v640_v61 = vmul.f32 %v596_v54, %v596_v54  ;;  %v638_v62 = vmul.f32 0.0625, %v634_v57  ;;  %v642_v63 = vmul.f32 %v598_v56, %v598_v56  ;;  %v690_v57 = vld [vmem:[%s1702_s3] sm:$0xf] }
 0x14f   :  { %v647_v0 = vmax.f32 %v643_v58, 0.0  ;;  %v649_v1 = vmax.f32 %v645_v59, 0.0  ;;  %v667_v11 = vunpack.c.l.s4 %v1587_v10  ;;  %v670_v14 = vshrl.u32 %v669_v12, 7 }
 0x150   :  { %v644_v2 = vsub.f32 %v636_v60, %v640_v61  ;;  %v646_v3 = vsub.f32 %v638_v62, %v642_v63 }
 0x151   :  { %v652_v4 = vadd.f32 1e-05, %v647_v0  ;;  %v654_v5 = vadd.f32 1e-05, %v649_v1  ;;  %v668_v13 = vunpack.c.0.s8 %v667_v11  ;;  %v694_v26 = vsub.s32 0, %v670_v14 }
 0x152   :  { %v648_v6 = vmax.f32 %v644_v2, 0.0  ;;  %v650_v7 = vmax.f32 %v646_v3, 0.0  ;;  %v698_v28 = vsub.s32 1, %v670_v14  ;;  %v702_v29 = vsub.s32 2, %v670_v14 }
 0x153   :  { %1461 = vrsqrt.f32 %v652_v4  ;;  %v671_v17 = vsub.s32 %v668_v13, %v670_v14  ;;  %v706_v30 = vsub.s32 3, %v670_v14 }
 0x154   :  { %v653_v8 = vadd.f32 1e-05, %v648_v6  ;;  %v655_v9 = vadd.f32 1e-05, %v650_v7  ;;  %1463 = vrsqrt.f32 %v654_v5 }
 0x156   :  { %1465 = vrsqrt.f32 %v653_v8 }
 0x157   :  { %1467 = vrsqrt.f32 %v655_v9 }
 0x160   :  { %v1462_v15 = vpop.eup %1461 }
 0x161   :  { %v1464_v16 = vpop.eup %1463 }
 0x163   :  { %v1466_v18 = vpop.eup %1465 }
 0x164   :  { %v1468_v19 = vpop.eup %1467  ;;  %v664_v20 = vcombine.low %v1462_v15, %v1466_v18 }
 0x165   :  { %v665_v21 = vcombine.low %v1464_v16, %v1468_v19 }
 0x166   :  { %v672_v22 = vrot.slane %v664_v20, %v671_v17 }
 0x167   :  { %v679_v23 = vrot.slane %v665_v21, %v671_v17 }
 0x169   :  { %v680_v24 = vcombine.low %v672_v22, %v679_v23 }
 0x16b   :  { %v687_v27 = vrot.slane %v680_v24, %v671_v17 }
 0x16d   :  { %v689_v31 = vmul.f32 %v687_v27, %v651_v25  ;;  %v1272_v27 = vld [vmem:[%s1704_s5] ss:$0 sm:$0xff] }
 0x16f   :  { %v695_v32 = vrot.slane %v689_v31, %v694_v26  ;;  %v699_v33 = vrot.slane %v689_v31, %v698_v28  ;;  %v703_v39 = vrot.slane %v689_v31, %v702_v29  ;;  %v707_v43 = vrot.slane %v689_v31, %v706_v30 }
 0x171   :  { %v712_v44 = vmul.f32 %v695_v32, %v595_v38  ;;  %v713_v45 = vmul.f32 %v699_v33, %v596_v54  ;;  %v714_v46 = vmul.f32 %v703_v39, %v597_v42  ;;  %v715_v47 = vmul.f32 %v707_v43, %v598_v56 }
 0x172   :  { %v753_v60 = vmul.f32 %v707_v43, %v1669_v49  ;;  %v747_v61 = vmul.f32 %v699_v33, %v1643_v36  ;;  %v751_v38 = vmul.f32 %v699_v33, %v1667_v48  ;;  %v749_v42 = vmul.f32 %v707_v43, %v1645_v37 }
 0x173   :  { %v720_v50 = vcombine.low %v712_v44, %v713_v45  ;;  %v721_v51 = vcombine.low %v714_v46, %v715_v47  ;;  %v746_v0 = vmul.f32 %v695_v32, %v1639_v34  ;;  %v750_v1 = vmul.f32 %v695_v32, %v1651_v40 }
 0x174   :  { %v748_v2 = vmul.f32 %v703_v39, %v1641_v35  ;;  %v752_v3 = vmul.f32 %v703_v39, %v1653_v41 }
 0x175   :  { %v728_v52 = vrot.slane %v720_v50, %v671_v17  ;;  %v735_v53 = vrot.slane %v721_v51, %v671_v17 }
 0x177   :  { %v736_v55 = vcombine.low %v728_v52, %v735_v53 }
 0x179   :  { %v743_v58 = vrot.slane %v736_v55, %v671_v17 }
 0x17b   :  { %v745_v59 = vsub.f32 %v690_v57, %v743_v58 }
 0x17d   :  { %v770_v54 = vrot.slane %v745_v59, %v706_v30  ;;  %v762_v56 = vrot.slane %v745_v59, %v698_v28  ;;  %v758_v62 = vrot.slane %v745_v59, %v694_v26  ;;  %v766_v63 = vrot.slane %v745_v59, %v702_v29 }
 0x17f   :  { %v782_v4 = vadd.f32 %v770_v54, %v753_v60  ;;  %v776_v49 = vadd.f32 %v762_v56, %v747_v61  ;;  %v780_v5 = vadd.f32 %v762_v56, %v751_v38  ;;  %v778_v36 = vadd.f32 %v770_v54, %v749_v42 }
 0x180   :  { %v775_v6 = vadd.f32 %v758_v62, %v746_v0  ;;  %v779_v48 = vadd.f32 %v758_v62, %v750_v1  ;;  %v777_v7 = vadd.f32 %v766_v63, %v748_v2  ;;  %v781_v37 = vadd.f32 %v766_v63, %v752_v3 }
 0x181   :  { %v784_v8 = vmax.f32 %v776_v49, 0.0  ;;  %v788_v9 = vmax.f32 %v780_v5, 0.0  ;;  %v786_v10 = vmax.f32 %v778_v36, 0.0  ;;  %v790_v11 = vmax.f32 %v782_v4, 0.0 }
 0x182   :  { %v783_v12 = vmax.f32 %v775_v6, 0.0  ;;  %v787_v34 = vmax.f32 %v779_v48, 0.0  ;;  %v785_v13 = vmax.f32 %v777_v7, 0.0  ;;  %v789_v40 = vmax.f32 %v781_v37, 0.0 }
 0x183   :  { %v794_v14 = vpack.c.bf16 %v788_v9, %v784_v8  ;;  %v796_v35 = vpack.c.bf16 %v790_v11, %v786_v10 }
 0x184   :  { %v793_v15 = vpack.c.bf16 %v787_v34, %v783_v12  ;;  %v795_v41 = vpack.c.bf16 %v789_v40, %v785_v13 }
 0x185   :  { %1085 = vmatprep.mubr.bf16.mxu0 %v794_v14  ;;  %1126 = vmatprep.mubr.bf16.mxu1 %v796_v35 }
 0x186   :  { %1086 = vmatmul.mubr.bf16.vlgmr.msra.gmra.mxu0 %v793_v15  ;;  %1127 = vmatmul.mubr.bf16.vlgmr.msra.gmra.mxu1 %v795_v41 }
 0x246   :  { %v1289_v16 = vpop.f32.mrf.mxu0  ;;  %v1311_v17 = vpop.f32.mrf.mxu1 }
 0x248   :  { %v1290_v18 = vpop.f32.mrf.mxu0  ;;  %v1312_v19 = vpop.f32.mrf.mxu1 }
 0x249   :  { %v1291_v20 = vadd.f32 %v1290_v18, %v1289_v16  ;;  %v1313_v21 = vadd.f32 %v1312_v19, %v1311_v17 }
 0x24a   :  { %v1292_v22 = vpop.f32.mrf.mxu0  ;;  %v1314_v23 = vpop.f32.mrf.mxu1 }
 0x24b   :  { %v1129_v24 = vadd.f32 %v1313_v21, %v1291_v20 }
 0x24c   :  { %v1293_v25 = vpop.f32.mrf.mxu0  ;;  %v1315_v26 = vpop.f32.mrf.mxu1 }
 0x24d   :  { %v1294_v28 = vadd.f32 %v1293_v25, %v1292_v22  ;;  %v1316_v29 = vadd.f32 %v1315_v26, %v1314_v23  ;;  %v1151_v31 = vadd.f32 %v1272_v27, %v1129_v24 }
 0x24f   :  { %v1132_v30 = vadd.f32 %v1316_v29, %v1294_v28  ;;  %1153 = vst [vmem:[#allocation10] sm:$0xff] %v1151_v31 }
 0x251   :  { %v1152_v32 = vadd.f32 %v1272_v27, %v1132_v30 }
 0x253   :  { %1154 = vst [vmem:[#allocation10 + $0x8] sm:$0xff] %v1152_v32 }
 0x254   :  { %1560 = shalt.err (!%p1557_p10)
}
 0x255   :  { %1166 = dma.vmem_to_hbm [thread:$0]  %s1161_s23, 256, %s1705_s6, [#allocation4], %s1581_s7, %s1581_s7, %s1582_s8  }
 0x256   :  { %1575 = dma.done.wait [#allocation4], 256  }
 0x257   :  { %1576 = vsyncadd [#allocation4], 4294967040 }
 0x258   :  { %1170 = vsyncpa [#allocation3], 1 }
 0x259   :  { %1171 = vsyncpa [#allocation6], 1 }
 0x25a   :  { %1172 = vsyncpa [#allocation9], 1 }
 0x25b   :  { %1173 = vsyncpa [#allocation4], 1 }

</bundles_post_ra>
